<compile_context>
chip_gen: v5e
topology: v5e:2x2
jax: 0.10.0
libtpu: 0.0.40
codegen_flags: <defaults>
</compile_context>

<pallas_src>
import jax
import jax.numpy as jnp
from jax.experimental import pallas as pl
from jax.experimental.pallas import tpu as pltpu


def _pad_to(n, m):
    return ((n + m - 1) // m) * m


# ----------------------------- kernel --------------------------------------


def mlp_kernel(x_ref, w1_ref, b1_ref, w2_ref, b2_ref,
               w3_ref, b3_ref, w4_ref, b4_ref, o_ref):
    # One batch tile per grid step; weights/biases use constant index_maps so
    # they stay VMEM-resident across steps. Four chained MXU matmuls with f32
    # accumulation; the x tile is cast to the compute dtype in-kernel (cheap,
    # avoids a wrapper-side HBM copy of x).
    cdt = w1_ref.dtype
    h = jnp.dot(x_ref[...].astype(cdt), w1_ref[...],
                preferred_element_type=jnp.float32) + b1_ref[...]
    h = jnp.maximum(h, 0.0).astype(cdt)
    h = jnp.dot(h, w2_ref[...],
                preferred_element_type=jnp.float32) + b2_ref[...]
    h = jnp.maximum(h, 0.0).astype(cdt)
    h = jnp.dot(h, w3_ref[...],
                preferred_element_type=jnp.float32) + b3_ref[...]
    h = jnp.maximum(h, 0.0).astype(cdt)
    o = jnp.dot(h, w4_ref[...],
                preferred_element_type=jnp.float32) + b4_ref[...]
    o_ref[...] = o.astype(o_ref.dtype)


# ------------------------ one-time parameter prep ---------------------------


def pad_params(params, compute_dtype=jnp.bfloat16):
    """Pad weights/biases ONCE (hoisted off the per-call path).

    Weights are cast to `compute_dtype` (bf16 default: MXU-native on
    v5e/v6e/v7x and half the HBM/VMEM footprint); biases stay f32 since they
    are added to the f32 MXU accumulator.
    """
    dims = [params["w1"].shape[0],
            params["w1"].shape[1], params["w2"].shape[1],
            params["w3"].shape[1], params["w4"].shape[1]]
    pdims = [_pad_to(d, 128) for d in dims]

    def pad_w(w, di, do):
        return (jnp.zeros((di, do), jnp.float32)
                .at[:w.shape[0], :w.shape[1]].set(w).astype(compute_dtype))

    def pad_b(b, do):
        return jnp.zeros((1, do), jnp.float32).at[0, :b.shape[0]].set(b)

    padded = {
        "w1": pad_w(params["w1"], pdims[0], pdims[1]), "b1": pad_b(params["b1"], pdims[1]),
        "w2": pad_w(params["w2"], pdims[1], pdims[2]), "b2": pad_b(params["b2"], pdims[2]),
        "w3": pad_w(params["w3"], pdims[2], pdims[3]), "b3": pad_b(params["b3"], pdims[3]),
        "w4": pad_w(params["w4"], pdims[3], pdims[4]), "b4": pad_b(params["b4"], pdims[4]),
    }
    meta = {"dims": tuple(dims), "pdims": tuple(pdims),
            "compute_dtype": compute_dtype}
    return padded, meta


# ------------------------------ forward -------------------------------------


def mlp_forward(x, padded, meta, *, block_b=1024, out_dtype=jnp.float32,
                core_parallel=False):
    """x: (B, in_features). padded/meta: output of pad_params().

    block_b: batch tile (sweep 512-2048 on large batches).
    out_dtype: kernel writeback dtype (use jnp.bfloat16 on the bf16 path to
               halve output HBM traffic; final (B, 2) slice is tiny anyway).
    core_parallel: set True on v7x so the batch axis is split across both
               TensorCores (plain "parallel" is a near no-op there).
    """
    dims, pdims = meta["dims"], meta["pdims"]
    B = x.shape[0]
    block_b = max(8, _pad_to(block_b, 8))

    # Pad only what's actually needed: batch to a multiple of 8 sublanes, and
    # features only if in_features isn't lane-aligned (it is for 512). For an
    # aligned batch this is a zero-copy passthrough.
    Bp = _pad_to(B, 8)
    pad_rows, pad_cols = Bp - B, pdims[0] - dims[0]
    if pad_rows or pad_cols:
        x_p = jnp.pad(x, ((0, pad_rows), (0, pad_cols)))
    else:
        x_p = x

    # Adaptive tile; ragged last tile via cdiv (no rounding Bp up to TB).
    # Rows are independent, so garbage/out-of-bounds tail rows only affect
    # output rows that are discarded. Do NOT add cross-row reductions here
    # without re-adding explicit batch padding/masking.
    TB = min(block_b, Bp)
    grid = (pl.cdiv(Bp, TB),)

    # Constant index_map => weights/biases DMA'd once, VMEM-resident.
    # TODO(synk): could add pipeline_mode=pl.Buffered(1) here to drop the
    # redundant second weight buffer (~450 KiB) if VMEM ever gets tight.
    resident = lambda shape: pl.BlockSpec(shape, lambda i: (0,) * len(shape))

    sem = (pltpu.CORE_PARALLEL,) if core_parallel else ("parallel",)

    out_p = pl.pallas_call(
        mlp_kernel,
        out_shape=jax.ShapeDtypeStruct((Bp, pdims[4]), out_dtype),
        grid=grid,
        in_specs=[
            pl.BlockSpec((TB, pdims[0]), lambda i: (i, 0)),      # x tile
            resident((pdims[0], pdims[1])), resident((1, pdims[1])),
            resident((pdims[1], pdims[2])), resident((1, pdims[2])),
            resident((pdims[2], pdims[3])), resident((1, pdims[3])),
            resident((pdims[3], pdims[4])), resident((1, pdims[4])),
        ],
        out_specs=pl.BlockSpec((TB, pdims[4]), lambda i: (i, 0)),  # out tile
        compiler_params=pltpu.CompilerParams(
            dimension_semantics=sem,
            vmem_limit_bytes=24 << 20,   # ~7-8 MiB live at TB=1024 f32
        ),
    )(x_p, padded["w1"], padded["b1"], padded["w2"], padded["b2"],
      padded["w3"], padded["b3"], padded["w4"], padded["b4"])

    return out_p[:B, :dims[4]]


# ------------------------------ test harness --------------------------------


def init_params(key, in_features=512, h1=100, h2=50, h3=5, out_features=2):
    """Deterministic init mirroring nn.Linear's U(-1/sqrt(fan_in), 1/sqrt(fan_in))."""
    sizes = [(in_features, h1), (h1, h2), (h2, h3), (h3, out_features)]
    params = {}
    for idx, (di, do) in enumerate(sizes, start=1):
        key, kw, kb = jax.random.split(key, 3)
        bound = 1.0 / jnp.sqrt(di)
        params[f"w{idx}"] = jax.random.uniform(kw, (di, do), jnp.float32, -bound, bound)
        params[f"b{idx}"] = jax.random.uniform(kb, (do,), jnp.float32, -bound, bound)
    return params


def reference_forward(x, params):
    h = jnp.maximum(x @ params["w1"] + params["b1"], 0.0)
    h = jnp.maximum(h @ params["w2"] + params["b2"], 0.0)
    h = jnp.maximum(h @ params["w3"] + params["b3"], 0.0)
    return h @ params["w4"] + params["b4"]


if __name__ == "__main__":
    key = jax.random.PRNGKey(0)
    kx, kx2, kp = jax.random.split(key, 3)
    in_features = 512

    params = init_params(kp, in_features=in_features)

    # --- f32 path, small aligned batch (single tile, zero-copy x passthrough) ---
    padded_f32, meta_f32 = pad_params(params, jnp.float32)
    B = 8
    x = jax.random.normal(kx, (B, in_features), jnp.float32)
    out = jax.block_until_ready(mlp_forward(x, padded_f32, meta_f32))
    ref = reference_forward(x, params)
    assert out.shape == (B, 2), out.shape
    assert jnp.allclose(out, ref, atol=1e-4, rtol=1e-4), \
        float(jnp.max(jnp.abs(out - ref)))

    # --- f32 path, ragged batch + multi-step grid (B=300, TB=128 -> 3 steps,
    #     partial last tile, 4 rows of batch padding) ---
    B2 = 300
    x2 = jax.random.normal(kx2, (B2, in_features), jnp.float32)
    out2 = jax.block_until_ready(mlp_forward(x2, padded_f32, meta_f32, block_b=128))
    ref2 = reference_forward(x2, params)
    assert out2.shape == (B2, 2), out2.shape
    assert jnp.allclose(out2, ref2, atol=1e-4, rtol=1e-4), \
        float(jnp.max(jnp.abs(out2 - ref2)))

    # --- bf16 default compute path (MXU-native), bf16 writeback, loose tol ---
    padded_bf16, meta_bf16 = pad_params(params)  # bf16 default
    out_bf16 = jax.block_until_ready(
        mlp_forward(x2, padded_bf16, meta_bf16, out_dtype=jnp.bfloat16))
    out_bf16 = out_bf16.astype(jnp.float32)
    assert out_bf16.shape == (B2, 2), out_bf16.shape
    assert jnp.allclose(out_bf16, ref2, atol=5e-2, rtol=5e-2), \
        float(jnp.max(jnp.abs(out_bf16 - ref2)))

    print("KERNEL_OK")
</pallas_src>

<mosaic_0001>
module attributes {stable_mosaic.version = 11 : i64} {
  func.func @mlp_kernel(%arg0: i32, %arg1: memref<8x512xf32, #tpu.memory_space<vmem>>, %arg2: memref<512x128xf32, #tpu.memory_space<vmem>>, %arg3: memref<1x128xf32, #tpu.memory_space<vmem>>, %arg4: memref<128x128xf32, #tpu.memory_space<vmem>>, %arg5: memref<1x128xf32, #tpu.memory_space<vmem>>, %arg6: memref<128x128xf32, #tpu.memory_space<vmem>>, %arg7: memref<1x128xf32, #tpu.memory_space<vmem>>, %arg8: memref<128x128xf32, #tpu.memory_space<vmem>>, %arg9: memref<1x128xf32, #tpu.memory_space<vmem>>, %arg10: memref<8x128xf32, #tpu.memory_space<vmem>>) attributes {dimension_semantics = [#tpu.dimension_semantics<parallel>], iteration_bounds = array<i64: 1>, scalar_prefetch = 0 : i64, scratch_operands = 0 : i64, tpu.core_type = #tpu.core_type<tc>, window_params = [{transform_indices = @transform_0, window_bounds = array<i64: 8, 512>}, {pipeline_mode = #tpu.pipeline_mode<synchronous>, transform_indices = @transform_1, window_bounds = array<i64: 512, 128>}, {pipeline_mode = #tpu.pipeline_mode<synchronous>, transform_indices = @transform_2, window_bounds = array<i64: 1, 128>}, {pipeline_mode = #tpu.pipeline_mode<synchronous>, transform_indices = @transform_3, window_bounds = array<i64: 128, 128>}, {pipeline_mode = #tpu.pipeline_mode<synchronous>, transform_indices = @transform_4, window_bounds = array<i64: 1, 128>}, {pipeline_mode = #tpu.pipeline_mode<synchronous>, transform_indices = @transform_5, window_bounds = array<i64: 128, 128>}, {pipeline_mode = #tpu.pipeline_mode<synchronous>, transform_indices = @transform_6, window_bounds = array<i64: 1, 128>}, {pipeline_mode = #tpu.pipeline_mode<synchronous>, transform_indices = @transform_7, window_bounds = array<i64: 128, 128>}, {pipeline_mode = #tpu.pipeline_mode<synchronous>, transform_indices = @transform_8, window_bounds = array<i64: 1, 128>}, {transform_indices = @transform_9, window_bounds = array<i64: 8, 128>}]} {
    %c0 = arith.constant 0 : index
    %c0_0 = arith.constant 0 : index
    %0 = vector.load %arg1[%c0, %c0_0] : memref<8x512xf32, #tpu.memory_space<vmem>>, vector<8x512xf32>
    %c0_1 = arith.constant 0 : index
    %c0_2 = arith.constant 0 : index
    %1 = vector.load %arg2[%c0_1, %c0_2] : memref<512x128xf32, #tpu.memory_space<vmem>>, vector<512x128xf32>
    %cst = arith.constant dense<0.000000e+00> : vector<8x128xf32>
    %2 = tpu.matmul %0, %1, %cst {dimension_numbers = #tpu.dot_dimension_numbers<[1], [0], [0], [1], [0, 0, 1, 1], [], []>} : vector<8x512xf32>, vector<512x128xf32>, vector<8x128xf32> -> vector<8x128xf32>
    %c0_3 = arith.constant 0 : index
    %c0_4 = arith.constant 0 : index
    %3 = vector.load %arg3[%c0_3, %c0_4] : memref<1x128xf32, #tpu.memory_space<vmem>>, vector<1x128xf32>
    %4 = vector.broadcast %3 : vector<1x128xf32> to vector<8x128xf32>
    %5 = arith.addf %2, %4 : vector<8x128xf32>
    %cst_5 = arith.constant 0.000000e+00 : f32
    %6 = vector.broadcast %cst_5 : f32 to vector<8x128xf32>
    %7 = arith.maximumf %5, %6 : vector<8x128xf32>
    %c0_6 = arith.constant 0 : index
    %c0_7 = arith.constant 0 : index
    %8 = vector.load %arg4[%c0_6, %c0_7] : memref<128x128xf32, #tpu.memory_space<vmem>>, vector<128x128xf32>
    %cst_8 = arith.constant dense<0.000000e+00> : vector<8x128xf32>
    %9 = tpu.matmul %7, %8, %cst_8 {dimension_numbers = #tpu.dot_dimension_numbers<[1], [0], [0], [1], [0, 0, 1, 1], [], []>} : vector<8x128xf32>, vector<128x128xf32>, vector<8x128xf32> -> vector<8x128xf32>
    %c0_9 = arith.constant 0 : index
    %c0_10 = arith.constant 0 : index
    %10 = vector.load %arg5[%c0_9, %c0_10] : memref<1x128xf32, #tpu.memory_space<vmem>>, vector<1x128xf32>
    %11 = vector.broadcast %10 : vector<1x128xf32> to vector<8x128xf32>
    %12 = arith.addf %9, %11 : vector<8x128xf32>
    %cst_11 = arith.constant 0.000000e+00 : f32
    %13 = vector.broadcast %cst_11 : f32 to vector<8x128xf32>
    %14 = arith.maximumf %12, %13 : vector<8x128xf32>
    %c0_12 = arith.constant 0 : index
    %c0_13 = arith.constant 0 : index
    %15 = vector.load %arg6[%c0_12, %c0_13] : memref<128x128xf32, #tpu.memory_space<vmem>>, vector<128x128xf32>
    %cst_14 = arith.constant dense<0.000000e+00> : vector<8x128xf32>
    %16 = tpu.matmul %14, %15, %cst_14 {dimension_numbers = #tpu.dot_dimension_numbers<[1], [0], [0], [1], [0, 0, 1, 1], [], []>} : vector<8x128xf32>, vector<128x128xf32>, vector<8x128xf32> -> vector<8x128xf32>
    %c0_15 = arith.constant 0 : index
    %c0_16 = arith.constant 0 : index
    %17 = vector.load %arg7[%c0_15, %c0_16] : memref<1x128xf32, #tpu.memory_space<vmem>>, vector<1x128xf32>
    %18 = vector.broadcast %17 : vector<1x128xf32> to vector<8x128xf32>
    %19 = arith.addf %16, %18 : vector<8x128xf32>
    %cst_17 = arith.constant 0.000000e+00 : f32
    %20 = vector.broadcast %cst_17 : f32 to vector<8x128xf32>
    %21 = arith.maximumf %19, %20 : vector<8x128xf32>
    %c0_18 = arith.constant 0 : index
    %c0_19 = arith.constant 0 : index
    %22 = vector.load %arg8[%c0_18, %c0_19] : memref<128x128xf32, #tpu.memory_space<vmem>>, vector<128x128xf32>
    %cst_20 = arith.constant dense<0.000000e+00> : vector<8x128xf32>
    %23 = tpu.matmul %21, %22, %cst_20 {dimension_numbers = #tpu.dot_dimension_numbers<[1], [0], [0], [1], [0, 0, 1, 1], [], []>} : vector<8x128xf32>, vector<128x128xf32>, vector<8x128xf32> -> vector<8x128xf32>
    %c0_21 = arith.constant 0 : index
    %c0_22 = arith.constant 0 : index
    %24 = vector.load %arg9[%c0_21, %c0_22] : memref<1x128xf32, #tpu.memory_space<vmem>>, vector<1x128xf32>
    %25 = vector.broadcast %24 : vector<1x128xf32> to vector<8x128xf32>
    %26 = arith.addf %23, %25 : vector<8x128xf32>
    %c0_23 = arith.constant 0 : index
    %c0_24 = arith.constant 0 : index
    %27 = vector.load %arg10[%c0_23, %c0_24] : memref<8x128xf32, #tpu.memory_space<vmem>>, vector<8x128xf32>
    tpu.vector_store %arg10[%c0_23, %c0_24], %26 {strides = array<i32>} : memref<8x128xf32, #tpu.memory_space<vmem>>, vector<8x128xf32>,
    return
  }
  func.func @transform_0(%arg0: i32) -> (i32, i32) {
    %c0_i32 = arith.constant 0 : i32
    %c0_i32_0 = arith.constant 0 : i32
    return %arg0, %c0_i32 : i32, i32
  }
  func.func @transform_1(%arg0: i32) -> (i32, i32) {
    %c0_i32 = arith.constant 0 : i32
    %c0_i32_0 = arith.constant 0 : i32
    %c0_i32_1 = arith.constant 0 : i32
    return %c0_i32, %c0_i32_0 : i32, i32
  }
  func.func @transform_2(%arg0: i32) -> (i32, i32) {
    %c0_i32 = arith.constant 0 : i32
    %c0_i32_0 = arith.constant 0 : i32
    %c0_i32_1 = arith.constant 0 : i32
    return %c0_i32, %c0_i32_0 : i32, i32
  }
  func.func @transform_3(%arg0: i32) -> (i32, i32) {
    %c0_i32 = arith.constant 0 : i32
    %c0_i32_0 = arith.constant 0 : i32
    %c0_i32_1 = arith.constant 0 : i32
    return %c0_i32, %c0_i32_0 : i32, i32
  }
  func.func @transform_4(%arg0: i32) -> (i32, i32) {
    %c0_i32 = arith.constant 0 : i32
    %c0_i32_0 = arith.constant 0 : i32
    %c0_i32_1 = arith.constant 0 : i32
    return %c0_i32, %c0_i32_0 : i32, i32
  }
  func.func @transform_5(%arg0: i32) -> (i32, i32) {
    %c0_i32 = arith.constant 0 : i32
    %c0_i32_0 = arith.constant 0 : i32
    %c0_i32_1 = arith.constant 0 : i32
    return %c0_i32, %c0_i32_0 : i32, i32
  }
  func.func @transform_6(%arg0: i32) -> (i32, i32) {
    %c0_i32 = arith.constant 0 : i32
    %c0_i32_0 = arith.constant 0 : i32
    %c0_i32_1 = arith.constant 0 : i32
    return %c0_i32, %c0_i32_0 : i32, i32
  }
  func.func @transform_7(%arg0: i32) -> (i32, i32) {
    %c0_i32 = arith.constant 0 : i32
    %c0_i32_0 = arith.constant 0 : i32
    %c0_i32_1 = arith.constant 0 : i32
    return %c0_i32, %c0_i32_0 : i32, i32
  }
  func.func @transform_8(%arg0: i32) -> (i32, i32) {
    %c0_i32 = arith.constant 0 : i32
    %c0_i32_0 = arith.constant 0 : i32
    %c0_i32_1 = arith.constant 0 : i32
    return %c0_i32, %c0_i32_0 : i32, i32
  }
  func.func @transform_9(%arg0: i32) -> (i32, i32) {
    %c0_i32 = arith.constant 0 : i32
    %c0_i32_0 = arith.constant 0 : i32
    return %arg0, %c0_i32 : i32, i32
  }
}

</mosaic_0001>

<bundles_post_ra>
// kernel: tpu_custom_call.1
= control target key start
LH: loop header
LB: loop body
LE: loop exit
PB: predicated region body
PF: predicated region fallthrough
CT: control target
= control target key end

     0   :  { %14 = vsyncpa [#allocation3], 0  ;;  %s656_s0 = inlined_call_operand.hbm [shape: f32[8,512], index: 0, kind: input, shape index: {}]   ;;  %s657_s1 = inlined_call_operand.hbm [shape: f32[512,128], index: 1, kind: input, shape index: {}]   ;;  %s658_s2 = inlined_call_operand.vmem [shape: f32[1,128], index: 2, kind: input, shape index: {}]   ;;  %s659_s3 = inlined_call_operand.hbm [shape: f32[128,128], index: 3, kind: input, shape index: {}]   ;;  %s660_s4 = inlined_call_operand.vmem [shape: f32[1,128], index: 4, kind: input, shape index: {}]   ;;  %s661_s5 = inlined_call_operand.hbm [shape: f32[128,128], index: 5, kind: input, shape index: {}]   ;;  %s662_s6 = inlined_call_operand.vmem [shape: f32[1,128], index: 6, kind: input, shape index: {}]   ;;  %s663_s7 = inlined_call_operand.hbm [shape: f32[128,128], index: 7, kind: input, shape index: {}]   ;;  %s664_s8 = inlined_call_operand.vmem [shape: f32[1,128], index: 8, kind: input, shape index: {}]   ;;  %s665_s9 = inlined_call_operand.hbm [shape: f32[8,128], index: 9, kind: output, shape index: {}]  }
   0x1   :  { %15 = vsyncpa [#allocation6], 0 }
   0x2   :  { %16 = vsyncpa [#allocation9], 0  ;;  %s33_s11 = sshll.u32 %s657_s1, 4  ;;  %s34_s11 = int_to_ptr.hbm [resolvable:$true] %s33_s11 }
   0x3   :  { %17 = vsyncpa [#allocation4], 0  ;;  %s568_s12 = smov [#allocation5]   ;;  %s63_s16 = sshll.u32 %s661_s5, 4  ;;  %s64_s16 = int_to_ptr.hbm [resolvable:$true] %s63_s16 }
   0x4   :  { %s35_s13 = sshll.u32 %s568_s12, 4  ;;  %s569_s17 = smov 128   ;;  %s36_s13 = int_to_ptr.vmem [resolvable:$true] %s35_s13 }
   0x5   :  { %s570_s18 = smov 8   ;;  %s571_s19 = smov [#allocation8]  }
   0x6   :  { %41 = dma.hbm_to_vmem [thread:$0]  %s34_s11, 8192, %s36_s13, [#allocation6], %s569_s17, %s569_s17, %s570_s18  }
   0x7   :  { %s65_s20 = sshll.u32 %s571_s19, 4  ;;  %s23_s23 = sshll.u32 %s656_s0, 4  ;;  %s66_s20 = int_to_ptr.vmem [resolvable:$true] %s65_s20  ;;  %s24_s23 = int_to_ptr.hbm [resolvable:$true] %s23_s23 }
   0x8   :  { %71 = dma.hbm_to_vmem [thread:$0]  %s64_s16, 2048, %s66_s20, [#allocation9], %s569_s17, %s569_s17, %s570_s18  }
   0x9   :  { %s48_s25 = sshll.u32 %s659_s3, 4  ;;  %s572_s26 = smov [#allocation2]   ;;  %s49_s25 = int_to_ptr.hbm [resolvable:$true] %s48_s25 }
   0xa   :  { %s25_s27 = sshll.u32 %s572_s26, 4  ;;  %s573_s5 = smov [#allocation7]   ;;  %s26_s27 = int_to_ptr.vmem [resolvable:$true] %s25_s27 }
   0xb   :  { %28 = dma.hbm_to_vmem [thread:$0]  %s24_s23, 512, %s26_s27, [#allocation3]  }
   0xc   :  { %s50_s28 = sshll.u32 %s573_s5, 4  ;;  %s78_s10 = sshll.u32 %s663_s7, 4  ;;  %s51_s28 = int_to_ptr.vmem [resolvable:$true] %s50_s28  ;;  %s79_s10 = int_to_ptr.hbm [resolvable:$true] %s78_s10 }
   0xd   :  { %56 = dma.hbm_to_vmem [thread:$0]  %s49_s25, 2048, %s51_s28, [#allocation6], %s569_s17, %s569_s17, %s570_s18  }
   0xe   :  { %s574_s0 = smov [#allocation10]  }
   0xf   :  { %s80_s11 = sshll.u32 %s574_s0, 4  ;;  %s81_s11 = int_to_ptr.vmem [resolvable:$true] %s80_s11 }
  0x10   :  { %86 = dma.hbm_to_vmem [thread:$0]  %s79_s10, 2048, %s81_s11, [#allocation9], %s569_s17, %s569_s17, %s570_s18  }
  0x11   :  { %560 = dma.done.wait [#allocation3], 512  }
  0x12   :  { %561 = vsyncadd [#allocation3], 4294966784 }
  0x13   :  { %562 = dma.done.wait [#allocation6], 10240  }
  0x14   :  { %563 = vsyncadd [#allocation6], 4294957056 }
  0x15   :  { %564 = dma.done.wait [#allocation9], 4096  }
  0x16   :  { %565 = vsyncadd [#allocation9], 4294963200  ;;  %v160_v0 = vld [vmem:[#allocation5 + $0x178] sm:$0xff]  ;;  %v159_v2 = vld [vmem:[#allocation5 + $0x170] sm:$0xff]  ;;  %s575_s16 = smov [#allocation11]   ;;  %s392_s20 = sshll.u32 %s665_s9, 4  ;;  %s393_s20 = int_to_ptr.hbm [resolvable:$true] %s392_s20 }
  0x17   :  { %v128_v1 = vld [vmem:[#allocation5 + $0x78] sm:$0xff]  ;;  %221 = vmatpush.msra.mxu2 %v160_v0  ;;  %v127_v4 = vld [vmem:[#allocation5 + $0x70] sm:$0xff]  ;;  %v158_v6 = vld [vmem:[#allocation5 + $0x168] sm:$0xff]  ;;  %s390_s17 = sshll.u32 %s575_s16, 4  ;;  %s391_s17 = int_to_ptr.vmem [resolvable:$true] %s390_s17 }
  0x18   :  { %181 = vmatpush.msra.mxu0 %v128_v1  ;;  %v176_v3 = vld [vmem:[#allocation5 + $0x1f8] sm:$0xff]  ;;  %v175_v7 = vld [vmem:[#allocation5 + $0x1f0] sm:$0xff]  ;;  %v126_v8 = vld [vmem:[#allocation5 + $0x68] sm:$0xff] }
  0x19   :  { %v144_v5 = vld [vmem:[#allocation5 + $0xf8] sm:$0xff]  ;;  %241 = vmatpush.msra.mxu3 %v176_v3  ;;  %222 = vmatpush.msra.mxu2 %v159_v2  ;;  %v143_v9 = vld [vmem:[#allocation5 + $0xf0] sm:$0xff]  ;;  %v174_v10 = vld [vmem:[#allocation5 + $0x1e8] sm:$0xff] }
  0x1a   :  { %201 = vmatpush.msra.mxu1 %v144_v5  ;;  %182 = vmatpush.msra.mxu0 %v127_v4  ;;  %v157_v11 = vld [vmem:[#allocation5 + $0x160] sm:$0xff]  ;;  %v142_v13 = vld [vmem:[#allocation5 + $0xe8] sm:$0xff]  ;;  %v156_v16 = vld [vmem:[#allocation5 + $0x158] sm:$0xff] }
  0x1b   :  { %242 = vmatpush.msra.mxu3 %v175_v7  ;;  %v125_v12 = vld [vmem:[#allocation5 + $0x60] sm:$0xff]  ;;  %223 = vmatpush.msra.mxu2 %v158_v6  ;;  %v124_v17 = vld [vmem:[#allocation5 + $0x58] sm:$0xff]  ;;  %v155_v20 = vld [vmem:[#allocation5 + $0x150] sm:$0xff] }
  0x1c   :  { %202 = vmatpush.msra.mxu1 %v143_v9  ;;  %183 = vmatpush.msra.mxu0 %v126_v8  ;;  %v173_v14 = vld [vmem:[#allocation5 + $0x1e0] sm:$0xff]  ;;  %v172_v18 = vld [vmem:[#allocation5 + $0x1d8] sm:$0xff]  ;;  %v123_v21 = vld [vmem:[#allocation5 + $0x50] sm:$0xff] }
  0x1d   :  { %v141_v15 = vld [vmem:[#allocation5 + $0xe0] sm:$0xff]  ;;  %243 = vmatpush.msra.mxu3 %v174_v10  ;;  %224 = vmatpush.msra.mxu2 %v157_v11  ;;  %v140_v19 = vld [vmem:[#allocation5 + $0xd8] sm:$0xff]  ;;  %v171_v22 = vld [vmem:[#allocation5 + $0x1d0] sm:$0xff] }
  0x1e   :  { %203 = vmatpush.msra.mxu1 %v142_v13  ;;  %184 = vmatpush.msra.mxu0 %v125_v12  ;;  %v139_v23 = vld [vmem:[#allocation5 + $0xd0] sm:$0xff]  ;;  %v154_v24 = vld [vmem:[#allocation5 + $0x148] sm:$0xff]  ;;  %v153_v28 = vld [vmem:[#allocation5 + $0x140] sm:$0xff] }
  0x1f   :  { %244 = vmatpush.msra.mxu3 %v173_v14  ;;  %225 = vmatpush.msra.mxu2 %v156_v16  ;;  %v122_v25 = vld [vmem:[#allocation5 + $0x48] sm:$0xff]  ;;  %v121_v29 = vld [vmem:[#allocation5 + $0x40] sm:$0xff]  ;;  %v152_v32 = vld [vmem:[#allocation5 + $0x138] sm:$0xff] }
  0x20   :  { %204 = vmatpush.msra.mxu1 %v141_v15  ;;  %185 = vmatpush.msra.mxu0 %v124_v17  ;;  %v170_v26 = vld [vmem:[#allocation5 + $0x1c8] sm:$0xff]  ;;  %v169_v30 = vld [vmem:[#allocation5 + $0x1c0] sm:$0xff]  ;;  %v120_v33 = vld [vmem:[#allocation5 + $0x38] sm:$0xff] }
  0x21   :  { %245 = vmatpush.msra.mxu3 %v172_v18  ;;  %226 = vmatpush.msra.mxu2 %v155_v20  ;;  %v138_v27 = vld [vmem:[#allocation5 + $0xc8] sm:$0xff]  ;;  %v137_v31 = vld [vmem:[#allocation5 + $0xc0] sm:$0xff]  ;;  %v168_v34 = vld [vmem:[#allocation5 + $0x1b8] sm:$0xff] }
  0x22   :  { %205 = vmatpush.msra.mxu1 %v140_v19  ;;  %186 = vmatpush.msra.mxu0 %v123_v21  ;;  %v136_v35 = vld [vmem:[#allocation5 + $0xb8] sm:$0xff]  ;;  %v151_v36 = vld [vmem:[#allocation5 + $0x130] sm:$0xff]  ;;  %v150_v40 = vld [vmem:[#allocation5 + $0x128] sm:$0xff] }
  0x23   :  { %246 = vmatpush.msra.mxu3 %v171_v22  ;;  %227 = vmatpush.msra.mxu2 %v154_v24  ;;  %v119_v37 = vld [vmem:[#allocation5 + $0x30] sm:$0xff]  ;;  %v118_v41 = vld [vmem:[#allocation5 + $0x28] sm:$0xff]  ;;  %v149_v44 = vld [vmem:[#allocation5 + $0x120] sm:$0xff] }
  0x24   :  { %206 = vmatpush.msra.mxu1 %v139_v23  ;;  %187 = vmatpush.msra.mxu0 %v122_v25  ;;  %v167_v38 = vld [vmem:[#allocation5 + $0x1b0] sm:$0xff]  ;;  %v166_v42 = vld [vmem:[#allocation5 + $0x1a8] sm:$0xff]  ;;  %v117_v45 = vld [vmem:[#allocation5 + $0x20] sm:$0xff] }
  0x25   :  { %247 = vmatpush.msra.mxu3 %v170_v26  ;;  %228 = vmatpush.msra.mxu2 %v153_v28  ;;  %v135_v39 = vld [vmem:[#allocation5 + $0xb0] sm:$0xff]  ;;  %v134_v43 = vld [vmem:[#allocation5 + $0xa8] sm:$0xff]  ;;  %v165_v46 = vld [vmem:[#allocation5 + $0x1a0] sm:$0xff] }
  0x26   :  { %207 = vmatpush.msra.mxu1 %v138_v27  ;;  %188 = vmatpush.msra.mxu0 %v121_v29  ;;  %v133_v47 = vld [vmem:[#allocation5 + $0xa0] sm:$0xff]  ;;  %v148_v48 = vld [vmem:[#allocation5 + $0x118] sm:$0xff]  ;;  %v147_v52 = vld [vmem:[#allocation5 + $0x110] sm:$0xff] }
  0x27   :  { %248 = vmatpush.msra.mxu3 %v169_v30  ;;  %229 = vmatpush.msra.mxu2 %v152_v32  ;;  %v116_v49 = vld [vmem:[#allocation5 + $0x18] sm:$0xff]  ;;  %v115_v53 = vld [vmem:[#allocation5 + $0x10] sm:$0xff]  ;;  %v146_v54 = vld [vmem:[#allocation5 + $0x108] sm:$0xff] }
  0x28   :  { %208 = vmatpush.msra.mxu1 %v137_v31  ;;  %189 = vmatpush.msra.mxu0 %v120_v33  ;;  %v164_v50 = vld [vmem:[#allocation5 + $0x198] sm:$0xff]  ;;  %v163_v55 = vld [vmem:[#allocation5 + $0x190] sm:$0xff]  ;;  %v114_v56 = vld [vmem:[#allocation5 + $0x8] sm:$0xff] }
  0x29   :  { %249 = vmatpush.msra.mxu3 %v168_v34  ;;  %230 = vmatpush.msra.mxu2 %v151_v36  ;;  %v132_v51 = vld [vmem:[#allocation5 + $0x98] sm:$0xff]  ;;  %v131_v57 = vld [vmem:[#allocation5 + $0x90] sm:$0xff]  ;;  %v162_v58 = vld [vmem:[#allocation5 + $0x188] sm:$0xff] }
  0x2a   :  { %209 = vmatpush.msra.mxu1 %v136_v35  ;;  %190 = vmatpush.msra.mxu0 %v119_v37  ;;  %v130_v59 = vld [vmem:[#allocation5 + $0x88] sm:$0xff]  ;;  %v145_v60 = vld [vmem:[#allocation5 + $0x100] sm:$0xff]  ;;  %v111_v62 = vld [vmem:[#allocation2 + $0x10] sm:$0xff] }
  0x2b   :  { %250 = vmatpush.msra.mxu3 %v167_v38  ;;  %231 = vmatpush.msra.mxu2 %v150_v40  ;;  %v113_v61 = vld [vmem:[#allocation5] sm:$0xff]  ;;  %v112_v1 = vld [vmem:[#allocation2 + $0x18] sm:$0xff]  ;;  %v110_v4 = vld [vmem:[#allocation2 + $0x8] sm:$0xff] }
  0x2c   :  { %210 = vmatpush.msra.mxu1 %v135_v39  ;;  %191 = vmatpush.msra.mxu0 %v118_v41  ;;  %v161_v63 = vld [vmem:[#allocation5 + $0x180] sm:$0xff]  ;;  %v277_v3 = vld [vmem:[#allocation7 + $0x78] sm:$0xff]  ;;  %v276_v5 = vld [vmem:[#allocation7 + $0x70] sm:$0xff] }
  0x2d   :  { %251 = vmatpush.msra.mxu3 %v166_v42  ;;  %232 = vmatpush.msra.mxu2 %v149_v44  ;;  %v109_v0 = vld [vmem:[#allocation2] sm:$0xff]  ;;  %v275_v6 = vld [vmem:[#allocation7 + $0x68] sm:$0xff]  ;;  %v273_v8 = vld [vmem:[#allocation7 + $0x58] sm:$0xff] }
  0x2e   :  { %211 = vmatpush.msra.mxu1 %v134_v43  ;;  %192 = vmatpush.msra.mxu0 %v117_v45  ;;  %v129_v2 = vld [vmem:[#allocation5 + $0x80] sm:$0xff]  ;;  %v272_v9 = vld [vmem:[#allocation7 + $0x50] sm:$0xff]  ;;  %v271_v10 = vld [vmem:[#allocation7 + $0x48] sm:$0xff] }
  0x2f   :  { %252 = vmatpush.msra.mxu3 %v165_v46  ;;  %233 = vmatpush.msra.mxu2 %v148_v48  ;;  %v274_v7 = vld [vmem:[#allocation7 + $0x60] sm:$0xff]  ;;  %v269_v12 = vld [vmem:[#allocation7 + $0x38] sm:$0xff]  ;;  %v268_v13 = vld [vmem:[#allocation7 + $0x30] sm:$0xff] }
  0x30   :  { %212 = vmatpush.msra.mxu1 %v133_v47  ;;  %193 = vmatpush.msra.mxu0 %v116_v49  ;;  %v270_v11 = vld [vmem:[#allocation7 + $0x40] sm:$0xff]  ;;  %v267_v14 = vld [vmem:[#allocation7 + $0x28] sm:$0xff]  ;;  %v265_v16 = vld [vmem:[#allocation7 + $0x18] sm:$0xff] }
  0x31   :  { %253 = vmatpush.msra.mxu3 %v164_v50  ;;  %234 = vmatpush.msra.mxu2 %v147_v52  ;;  %v266_v15 = vld [vmem:[#allocation7 + $0x20] sm:$0xff]  ;;  %v264_v17 = vld [vmem:[#allocation7 + $0x10] sm:$0xff]  ;;  %v263_v18 = vld [vmem:[#allocation7 + $0x8] sm:$0xff] }
  0x32   :  { %213 = vmatpush.msra.mxu1 %v132_v51  ;;  %194 = vmatpush.msra.mxu0 %v115_v53  ;;  %v262_v19 = vld [vmem:[#allocation7] sm:$0xff]  ;;  %v318_v20 = vld [vmem:[#allocation8 + $0x78] sm:$0xff]  ;;  %v317_v21 = vld [vmem:[#allocation8 + $0x70] sm:$0xff] }
  0x33   :  { %254 = vmatpush.msra.mxu3 %v163_v55  ;;  %235 = vmatpush.msra.mxu2 %v146_v54  ;;  %v316_v22 = vld [vmem:[#allocation8 + $0x68] sm:$0xff]  ;;  %v315_v23 = vld [vmem:[#allocation8 + $0x60] sm:$0xff]  ;;  %v314_v24 = vld [vmem:[#allocation8 + $0x58] sm:$0xff] }
  0x34   :  { %214 = vmatpush.msra.mxu1 %v131_v57  ;;  %195 = vmatpush.msra.mxu0 %v114_v56  ;;  %v313_v25 = vld [vmem:[#allocation8 + $0x50] sm:$0xff]  ;;  %v312_v26 = vld [vmem:[#allocation8 + $0x48] sm:$0xff]  ;;  %v311_v27 = vld [vmem:[#allocation8 + $0x40] sm:$0xff] }
  0x35   :  { %255 = vmatpush.msra.mxu3 %v162_v58  ;;  %236 = vmatpush.msra.mxu2 %v145_v60  ;;  %v310_v28 = vld [vmem:[#allocation8 + $0x38] sm:$0xff]  ;;  %v309_v29 = vld [vmem:[#allocation8 + $0x30] sm:$0xff]  ;;  %v412_v30 = vld [vmem:[%s658_s2] ss:$0 sm:$0xff] }
  0x36   :  { %215 = vmatpush.msra.mxu1 %v130_v59  ;;  %196 = vmatpush.msra.mxu0 %v113_v61  ;;  %v308_v31 = vld [vmem:[#allocation8 + $0x28] sm:$0xff]  ;;  %v307_v33 = vld [vmem:[#allocation8 + $0x20] sm:$0xff]  ;;  %v306_v36 = vld [vmem:[#allocation8 + $0x18] sm:$0xff] }
  0x37   :  { %237 = vmatmul.f32.vlgmr.msra.gmra.mxu2 %v111_v62  ;;  %256 = vmatpush.msra.mxu3 %v161_v63  ;;  %v305_v43 = vld [vmem:[#allocation8 + $0x10] sm:$0xff]  ;;  %v304_v44 = vld [vmem:[#allocation8 + $0x8] sm:$0xff]  ;;  %v303_v45 = vld [vmem:[#allocation8] sm:$0xff] }
  0x38   :  { %197 = vmatmul.f32.vlgmr.msra.gmra.mxu0 %v109_v0  ;;  %257 = vmatmul.f32.vlgmr.msra.gmra.mxu3 %v112_v1  ;;  %v359_v46 = vld [vmem:[#allocation10 + $0x78] sm:$0xff]  ;;  %v358_v47 = vld [vmem:[#allocation10 + $0x70] sm:$0xff]  ;;  %v357_v48 = vld [vmem:[#allocation10 + $0x68] sm:$0xff] }
  0x39   :  { %216 = vmatpush.msra.mxu1 %v129_v2  ;;  %282 = vmatpush.msrb.mxu0 %v277_v3  ;;  %v356_v49 = vld [vmem:[#allocation10 + $0x60] sm:$0xff]  ;;  %v355_v50 = vld [vmem:[#allocation10 + $0x58] sm:$0xff]  ;;  %v354_v51 = vld [vmem:[#allocation10 + $0x50] sm:$0xff] }
  0x3a   :  { %217 = vmatmul.f32.vlgmr.msra.gmra.mxu1 %v110_v4  ;;  %364 = vmatpush.msrb.mxu2 %v359_v46  ;;  %v353_v52 = vld [vmem:[#allocation10 + $0x48] sm:$0xff]  ;;  %v352_v53 = vld [vmem:[#allocation10 + $0x40] sm:$0xff]  ;;  %v351_v54 = vld [vmem:[#allocation10 + $0x38] sm:$0xff] }
  0x3b   :  { %283 = vmatpush.msrb.mxu0 %v276_v5  ;;  %323 = vmatpush.msrb.mxu1 %v318_v20  ;;  %v350_v55 = vld [vmem:[#allocation10 + $0x30] sm:$0xff]  ;;  %v349_v56 = vld [vmem:[#allocation10 + $0x28] sm:$0xff]  ;;  %v348_v57 = vld [vmem:[#allocation10 + $0x20] sm:$0xff] }
  0x3c   :  { %365 = vmatpush.msrb.mxu2 %v358_v47  ;;  %v347_v58 = vld [vmem:[#allocation10 + $0x18] sm:$0xff]  ;;  %v413_v59 = vld [vmem:[%s660_s4] ss:$0 sm:$0xff]  ;;  %v346_v63 = vld [vmem:[#allocation10 + $0x10] sm:$0xff] }
  0x3d   :  { %284 = vmatpush.msrb.mxu0 %v275_v6  ;;  %324 = vmatpush.msrb.mxu1 %v317_v21  ;;  %v345_v0 = vld [vmem:[#allocation10 + $0x8] sm:$0xff]  ;;  %v344_v1 = vld [vmem:[#allocation10] sm:$0xff] }
  0x3e   :  { %366 = vmatpush.msrb.mxu2 %v357_v48  ;;  %v414_v2 = vld [vmem:[%s662_s6] ss:$0 sm:$0xff] }
  0x3f   :  { %285 = vmatpush.msrb.mxu0 %v274_v7  ;;  %325 = vmatpush.msrb.mxu1 %v316_v22  ;;  %v415_v6 = vld [vmem:[%s664_s8] ss:$0 sm:$0xff] }
  0x40   :  { %367 = vmatpush.msrb.mxu2 %v356_v49 }
  0x41   :  { %286 = vmatpush.msrb.mxu0 %v273_v8  ;;  %326 = vmatpush.msrb.mxu1 %v315_v23 }
  0x42   :  { %368 = vmatpush.msrb.mxu2 %v355_v50 }
  0x43   :  { %287 = vmatpush.msrb.mxu0 %v272_v9  ;;  %327 = vmatpush.msrb.mxu1 %v314_v24 }
  0x44   :  { %369 = vmatpush.msrb.mxu2 %v354_v51 }
  0x45   :  { %288 = vmatpush.msrb.mxu0 %v271_v10  ;;  %328 = vmatpush.msrb.mxu1 %v313_v25 }
  0x46   :  { %370 = vmatpush.msrb.mxu2 %v353_v52 }
  0x47   :  { %289 = vmatpush.msrb.mxu0 %v270_v11  ;;  %329 = vmatpush.msrb.mxu1 %v312_v26 }
  0x48   :  { %371 = vmatpush.msrb.mxu2 %v352_v53 }
  0x49   :  { %290 = vmatpush.msrb.mxu0 %v269_v12  ;;  %330 = vmatpush.msrb.mxu1 %v311_v27 }
  0x4a   :  { %372 = vmatpush.msrb.mxu2 %v351_v54 }
  0x4b   :  { %291 = vmatpush.msrb.mxu0 %v268_v13  ;;  %331 = vmatpush.msrb.mxu1 %v310_v28 }
  0x4c   :  { %373 = vmatpush.msrb.mxu2 %v350_v55 }
  0x4d   :  { %292 = vmatpush.msrb.mxu0 %v267_v14  ;;  %332 = vmatpush.msrb.mxu1 %v309_v29 }
  0x4e   :  { %374 = vmatpush.msrb.mxu2 %v349_v56 }
  0x4f   :  { %293 = vmatpush.msrb.mxu0 %v266_v15  ;;  %333 = vmatpush.msrb.mxu1 %v308_v31 }
  0x50   :  { %375 = vmatpush.msrb.mxu2 %v348_v57 }
  0x51   :  { %294 = vmatpush.msrb.mxu0 %v265_v16  ;;  %334 = vmatpush.msrb.mxu1 %v307_v33 }
  0x52   :  { %376 = vmatpush.msrb.mxu2 %v347_v58 }
  0x53   :  { %295 = vmatpush.msrb.mxu0 %v264_v17  ;;  %335 = vmatpush.msrb.mxu1 %v306_v36 }
  0x54   :  { %377 = vmatpush.msrb.mxu2 %v346_v63 }
  0x55   :  { %296 = vmatpush.msrb.mxu0 %v263_v18  ;;  %336 = vmatpush.msrb.mxu1 %v305_v43 }
  0x56   :  { %378 = vmatpush.msrb.mxu2 %v345_v0 }
  0x57   :  { %297 = vmatpush.msrb.mxu0 %v262_v19  ;;  %337 = vmatpush.msrb.mxu1 %v304_v44 }
  0x58   :  { %379 = vmatpush.msrb.mxu2 %v344_v1 }
  0x59   :  { %338 = vmatpush.msrb.mxu1 %v303_v45 }
  0xb5   :  { %v198_v32 = vpop.f32.mrf.mxu0 }
  0xb6   :  { %v199_v34 = vadd.f32 %v412_v30, %v198_v32 }
  0xb7   :  { %v218_v35 = vpop.f32.mrf.mxu1 }
  0xb8   :  { %v219_v37 = vadd.f32 %v218_v35, %v199_v34 }
  0xba   :  { %v238_v38 = vpop.f32.mrf.mxu2 }
  0xbb   :  { %v239_v39 = vadd.f32 %v238_v38, %v219_v37  ;;  %v258_v40 = vpop.f32.mrf.mxu3 }
  0xbd   :  { %v259_v41 = vadd.f32 %v258_v40, %v239_v39 }
  0xbf   :  { %v261_v42 = vmax.f32 %v259_v41, 0.0 }
  0xc1   :  { %298 = vmatmul.f32.vlgmr.msrb.gmra.mxu0 %v261_v42 }
 0x13e   :  { %v299_v60 = vpop.f32.mrf.mxu0 }
 0x13f   :  { %v300_v61 = vadd.f32 %v413_v59, %v299_v60 }
 0x141   :  { %v302_v62 = vmax.f32 %v300_v61, 0.0 }
 0x143   :  { %339 = vmatmul.f32.vlgmr.msrb.gmra.mxu1 %v302_v62 }
 0x1c0   :  { %v340_v3 = vpop.f32.mrf.mxu1 }
 0x1c1   :  { %v341_v4 = vadd.f32 %v414_v2, %v340_v3 }
 0x1c3   :  { %v343_v5 = vmax.f32 %v341_v4, 0.0 }
 0x1c5   :  { %380 = vmatmul.f32.vlgmr.msrb.gmra.mxu2 %v343_v5 }
 0x248   :  { %v381_v7 = vpop.f32.mrf.mxu2 }
 0x249   :  { %v382_v8 = vadd.f32 %v415_v6, %v381_v7 }
 0x24b   :  { %384 = vst [vmem:[#allocation11] sm:$0xff] %v382_v8 }
 0x24c   :  { %395 = dma.vmem_to_hbm [thread:$0]  %s391_s17, 128, %s393_s20, [#allocation4]  }
 0x24d   :  { %566 = dma.done.wait [#allocation4], 128  }
 0x24e   :  { %567 = vsyncadd [#allocation4], 4294967168 }
 0x24f   :  { %400 = vsyncpa [#allocation3], 1 }
 0x250   :  { %401 = vsyncpa [#allocation6], 1 }
 0x251   :  { %402 = vsyncpa [#allocation9], 1 }
 0x252   :  { %403 = vsyncpa [#allocation4], 1 }

</bundles_post_ra>
